<compile_context>
chip_gen: v7x
topology: tpu7x:2x2x1
jax: 0.10.0
libtpu: 0.0.40
codegen_flags: <defaults>
</compile_context>

<pallas_src>
import functools

import jax
import jax.numpy as jnp
from jax.experimental import pallas as pl
from jax.experimental.pallas import tpu as pltpu


def _concat_pool_kernel(x_ref, o_ref, *, inv_hw):
    # x_ref block : (n_tile, c_tile, HW)   -- lane-dense along flattened H*W
    # o_ref block : (n_tile, 2, c_tile)    -- [:,0,:] = max pool, [:,1,:] = avg
    x = x_ref[...]
    o_ref[:, 0, :] = jnp.max(x, axis=-1).astype(o_ref.dtype)
    s = jnp.sum(x, axis=-1, dtype=jnp.float32)          # f32 accumulation
    o_ref[:, 1, :] = (s * inv_hw).astype(o_ref.dtype)   # constant reciprocal


def _divisors(n):
    return [d for d in range(1, n + 1) if n % d == 0]


def _pick_tiles(N, C, HW, itemsize):
    """Pick (n_tile, c_tile) such that:
      * c_tile is a multiple of 128 (lane-dense output, aligned input
        sublanes) or the full C extent,
      * the lane/sublane-PADDED input block fits a per-buffer budget that is
        double-buffer safe on v5e/v6e (128 MiB VMEM) and v7x (64 MiB),
      * the grid keeps >= 2 steps when possible (feeds both v7x TensorCores).
    Returns (n_tile, c_tile, padded_block_bytes)."""
    budget = 12 * 1024 * 1024          # per input buffer; Pallas double-buffers
    hw_pad = -(-HW // 128) * 128       # lane padding of the flattened H*W axis

    def block_bytes(n_t, c_t):
        c_pad = -(-c_t // 8) * 8       # sublane padding
        return n_t * c_pad * hw_pad * itemsize

    c_cands = [d for d in _divisors(C) if d % 128 == 0] or [C]
    n_cands = sorted(_divisors(N), reverse=True)

    pairs = [(n, c) for n in n_cands for c in c_cands]
    fitting = [p for p in pairs if block_bytes(*p) <= budget]
    if fitting:
        multi = [p for p in fitting if (N // p[0]) * (C // p[1]) >= 2]
        pool = multi or fitting
        # Biggest block first; prefer larger c_tile (contiguous HBM reads).
        n_tile, c_tile = max(pool, key=lambda p: (block_bytes(*p), p[1], p[0]))
    else:
        # Nothing fits the budget (huge H*W): smallest legal block; the caller
        # raises vmem_limit_bytes to cover it.
        n_tile, c_tile = min(pairs, key=lambda p: block_bytes(*p))
    return n_tile, c_tile, block_bytes(n_tile, c_tile)


def adaptive_concat_pool2d(x):
    """AdaptiveConcatPool2d(sz=1) forward. x: (N, C, H, W) -> (N, 2*C, 1, 1)."""
    N, C, H, W = x.shape
    HW = H * W
    x2 = x.reshape(N, C, HW)  # free view on contiguous NCHW

    n_tile, c_tile, blk_bytes = _pick_tiles(N, C, HW, x.dtype.itemsize)
    grid = (N // n_tile, C // c_tile)

    # 2x input double buffer + tiny output buffers + headroom; stays well under
    # v7x's 64 MiB physical VMEM with the 12 MiB per-buffer budget above.
    vmem_limit = max(48 * 1024 * 1024, 2 * blk_bytes + 8 * 1024 * 1024)

    kernel = functools.partial(_concat_pool_kernel, inv_hw=float(1.0 / HW))

    out = pl.pallas_call(
        kernel,
        out_shape=jax.ShapeDtypeStruct((N, 2, C), x.dtype),
        grid=grid,
        in_specs=[
            pl.BlockSpec((n_tile, c_tile, HW), lambda n, c: (n, c, 0)),
        ],
        out_specs=pl.BlockSpec((n_tile, 2, c_tile), lambda n, c: (n, 0, c)),
        compiler_params=pltpu.CompilerParams(
            dimension_semantics=("parallel", "parallel"),
            vmem_limit_bytes=vmem_limit,
        ),
    )(x2)

    # (N, 2, C) -> (N, 2C, 1, 1) is a free view; PyTorch order (max then avg).
    return out.reshape(N, 2 * C, 1, 1)


if __name__ == "__main__":
    key = jax.random.PRNGKey(0)
    N, C, H, W = 2, 4, 16, 16
    x = jax.random.normal(key, (N, C, H, W), dtype=jnp.float32)

    y = adaptive_concat_pool2d(x)
    y = jax.block_until_ready(y)

    # Reference (plain JAX): max pool then avg pool, concatenated on C.
    ref_max = jnp.max(x, axis=(2, 3), keepdims=True)
    ref_avg = jnp.mean(x, axis=(2, 3), keepdims=True)
    ref = jnp.concatenate([ref_max, ref_avg], axis=1)

    assert y.shape == (N, 2 * C, 1, 1), y.shape
    assert jnp.allclose(y, ref, atol=1e-5, rtol=1e-5), "mismatch vs reference"

    print("KERNEL_OK")
</pallas_src>

<mosaic_0001>
module attributes {stable_mosaic.version = 11 : i64} {
  func.func @_concat_pool_kernel(%arg0: i32, %arg1: i32, %arg2: memref<1x4x256xf32, #tpu.memory_space<vmem>>, %arg3: memref<1x2x4xf32, #tpu.memory_space<vmem>>) attributes {dimension_semantics = [#tpu.dimension_semantics<parallel>, #tpu.dimension_semantics<parallel>], iteration_bounds = array<i64: 2, 1>, scalar_prefetch = 0 : i64, scratch_operands = 0 : i64, tpu.core_type = #tpu.core_type<tc>, window_params = [{transform_indices = @transform_0, window_bounds = array<i64: 1, 4, 256>}, {transform_indices = @transform_1, window_bounds = array<i64: 1, 2, 4>}]} {
    %c0 = arith.constant 0 : index
    %c0_0 = arith.constant 0 : index
    %c0_1 = arith.constant 0 : index
    %0 = vector.load %arg2[%c0, %c0_0, %c0_1] : memref<1x4x256xf32, #tpu.memory_space<vmem>>, vector<1x4x256xf32>
    %cst = arith.constant dense<0xFF800000> : vector<1x4xf32>
    %1 = vector.multi_reduction <maximumf>, %0, %cst [2] : vector<1x4x256xf32> to vector<1x4xf32>
    %c0_2 = arith.constant 0 : index
    %c0_3 = arith.constant 0 : index
    %c0_4 = arith.constant 0 : index
    %2 = vector.load %arg3[%c0_2, %c0_3, %c0_4] : memref<1x2x4xf32, #tpu.memory_space<vmem>>, vector<1x1x4xf32>
    %3 = vector.shape_cast %2 : vector<1x1x4xf32> to vector<1x4xf32>
    %4 = vector.shape_cast %1 : vector<1x4xf32> to vector<1x1x4xf32>
    tpu.vector_store %arg3[%c0_2, %c0_3, %c0_4], %4 {strides = array<i32>} : memref<1x2x4xf32, #tpu.memory_space<vmem>>, vector<1x1x4xf32>,
    %cst_5 = arith.constant dense<0.000000e+00> : vector<1x4xf32>
    %5 = vector.multi_reduction <add>, %0, %cst_5 [2] : vector<1x4x256xf32> to vector<1x4xf32>
    %cst_6 = arith.constant 3.906250e-03 : f32
    %6 = vector.broadcast %cst_6 : f32 to vector<1x4xf32>
    %7 = arith.mulf %5, %6 : vector<1x4xf32>
    %c0_7 = arith.constant 0 : index
    %c1 = arith.constant 1 : index
    %c0_8 = arith.constant 0 : index
    %8 = vector.load %arg3[%c0_7, %c1, %c0_8] : memref<1x2x4xf32, #tpu.memory_space<vmem>>, vector<1x1x4xf32>
    %9 = vector.shape_cast %8 : vector<1x1x4xf32> to vector<1x4xf32>
    %10 = vector.shape_cast %7 : vector<1x4xf32> to vector<1x1x4xf32>
    tpu.vector_store %arg3[%c0_7, %c1, %c0_8], %10 {strides = array<i32>} : memref<1x2x4xf32, #tpu.memory_space<vmem>>, vector<1x1x4xf32>,
    return
  }
  func.func @transform_0(%arg0: i32, %arg1: i32) -> (i32, i32, i32) {
    %c0_i32 = arith.constant 0 : i32
    %c0_i32_0 = arith.constant 0 : i32
    return %arg0, %arg1, %c0_i32 : i32, i32, i32
  }
  func.func @transform_1(%arg0: i32, %arg1: i32) -> (i32, i32, i32) {
    %c0_i32 = arith.constant 0 : i32
    %c0_i32_0 = arith.constant 0 : i32
    return %arg0, %c0_i32, %arg1 : i32, i32, i32
  }
}

</mosaic_0001>

<bundles_post_ra>
// kernel: tpu_custom_call.1
= control target key start
LH: loop header
LB: loop body
LE: loop exit
PB: predicated region body
PF: predicated region fallthrough
CT: control target
= control target key end

     0   :  { %6 = vsyncpa [#allocation3], 0  ;;  %s658_s0 = inlined_call_operand.hbm [shape: f32[2,4,256], index: 0, kind: input, shape index: {}]   ;;  %s659_s1 = inlined_call_operand.hbm [shape: f32[2,2,4], index: 1, kind: output, shape index: {}]  }
   0x1   :  { %8 = vsyncpa [#allocation3 + $0x1], 0 }
   0x2   :  { %9 = vsyncpa [#allocation4], 0 }
   0x3   :  { %11 = vsyncpa [#allocation4 + $0x1], 0  ;;  %s485_s6 = smov 0   ;;  %s487_s7 = smov 0  }
   0x4   :  { %s489_s8 = smov 0   ;;  %s491_s9 = smov 0  }
   0x5   :  { %s493_s10 = smov 0   ;;  %s495_s11 = smov 0  }
   0x6 LB: > { %s281_s12 = sadd.s32 4294967295, %s471_s11   ;;  %s282_s13 = sadd.s32 4294967294, %s471_s11   ;;  %s471_s11 = sphi %s495_s11, %s17_s11   ;;  %s467_s10 = sphi %s493_s10, %s675_s10   ;;  %s463_s9 = sphi %s491_s9, %s674_s9   ;;  %s459_s8 = sphi %s489_s8, %s673_s8   ;;  %s455_s7 = sphi %s487_s7, %s672_s7   ;;  %s451_s6 = sphi %s485_s6, %s671_s6  }
   0x7   : > { %s29_s14 = sadd.s32 1, %s467_s10  ;;  %s38_s15 = sadd.s32 1, %s459_s8 }
   0x8   : > { %p31_p0 = scmp.ge.s32.totalorder %s29_s14, 2  ;;  %p45_p1 = scmp.ne.s32.totalorder %s459_s8, %s455_s7 }
   0x9   : > { %p46_p2 = scmp.eq.s32.totalorder %s471_s11, 0  ;;  %p51_p3 = scmp.ne.s32.totalorder %s455_s7, %s451_s6 }
   0xa   : > { %s677_s14 = smov (%p31_p0, %s29_s14), 0  ;;  %p52_p5 = scmp.eq.s32.totalorder %s281_s12, 0 }
   0xb   : > { %p526_p4 = por %p46_p2, %p45_p1  ;;  %s33_s17 = ssub.s32 %s467_s10, %s677_s14 }
   0xc   : > { %p77_p6 = scmp.eq.s32.totalorder %s281_s12, 1  ;;  %p36_p7 = scmp.eq.s32.totalorder %s33_s17, 0 }
   0xd   : > { %p532_p8 = por %p52_p5, %p51_p3  ;;  %p83_p10 = scmp.eq.s32.totalorder %s282_s13, 1 }
   0xe   : > { %p536_p9 = por %p77_p6, %p45_p1  ;;  %p308_p13 = scmp.lt.s32.totalorder %s471_s11, 2 }
   0xf   : > { %s541_s20 = scalar_select %p36_p7, %s459_s8, %s38_s15  }
  0x10   : > { %s663_s19 = scalar_select %p536_p9, 1, 0 }
  0x11   : > { %p543_p11 = por %p83_p10, %p51_p3  ;;  %s103_s22 = sand.u32 1, %s459_s8  }
  0x12   : > { %s285_s23 = sshll.u32 %s103_s22, 3  ;;  %s295_s24 = sshll.u32 %s467_s10, 7 }
  0x13   : > { %s664_s21 = scalar_select %p543_p11, 1, 0 }
  0x14   : > { %s554_s27 = scalar_lea.hbm %s658_s0, %s295_s24  ;;  %s107_s28 = scalar_lea.vmem [#allocation2], %s285_s23 }
  0x15   : > { %s117_s29 = sshll.u32 %s107_s28, 4  ;;  %p560_p0 = pnand %p308_p13, %p526_p4  ;;  %s556_s29 = int_to_ptr.vmem [resolvable:$true] %s117_s29 }
  0x16   : > { %s104_s2 = scalar_lea.sflag [#allocation3], %s103_s22  ;;  %s359_s3 = scalar_lea.hbm %s554_s27, 128 }
  0x17   : > { %p360_p3 = scmp.ne.s32.totalorder %s554_s27, %s359_s3  ;;  %p361_p5 = pneg %p560_p0 }
  0x18   : > { %s364_s12 = scalar_lea.hbm %s658_s0, 256  ;;  %p365_p4 = scmp.lt.u32.totalorder %s554_s27, %s658_s0 }
  0x19   : > { %p362_p6 = pnand %p361_p5, %p360_p3  ;;  %p366_p10 = scmp.lt.u32.totalorder %s364_s12, %s359_s3 }
  0x1a   : > { %p368_p12 = scmp.lt.u32.totalorder %s359_s3, %s554_s27 }
  0x1b   : > { %p363_p7 = pneg %p362_p6  ;;  %p367_p13 = por %p366_p10, %p365_p4 }
  0x1d   : > { %p369_p1 = por %p368_p12, %p367_p13 }
  0x1f   : > { %p370_p2 = pnand %p369_p1, %p363_p7 }
  0x21   : > { %373 = shalt.err (!%p370_p2)
}
  0x22   : > { %s374_s16 = scalar_lea.vmem %s556_s29, 128  ;;  %s473_s17 = smov [#allocation2]  }
  0x23   : > { %p375_p3 = scmp.ne.s32.totalorder %s556_s29, %s374_s16  ;;  %s379_s22 = sshll.u32 %s473_s17, 4  ;;  %s380_s22 = int_to_ptr.vmem [resolvable:$false] %s379_s22 }
  0x24   : > { %s381_s23 = scalar_lea.vmem %s380_s22, 256  ;;  %p382_p9 = scmp.lt.s32.totalorder %s556_s29, %s380_s22 }
  0x25   : > { %p377_p6 = pnand %p375_p3, %p361_p5  ;;  %p383_p4 = scmp.lt.s32.totalorder %s381_s23, %s374_s16 }
  0x27   : > { %p378_p11 = pneg %p377_p6  ;;  %p384_p10 = por %p383_p4, %p382_p9 }
  0x29   : > { %p385_p12 = pnand %p384_p10, %p378_p11 }
  0x2b   : > { %388 = shalt.err (!%p385_p12)
}
  0x2c   : > { %303 = dma.hbm_to_vmem [thread:$0]  (!%p560_p0), %s554_s27, 128, %s556_s29, %s104_s2  }
  0x2d   : > { %p666_p1 = scmp.lt.s32.totalorder %s471_s11, 3  ;;  %p667_p2 = scmp.ge.s32.totalorder %s471_s11, 1 }
  0x2f   : > { %p123_p5 = pnand %p667_p2, %p666_p1 }
  0x30   : > { %s596_s24 = sand.u32 (!%p123_p5), 1, %s455_s7  }
  0x31   : > { %126 = sbr.rel (%p123_p5) target bundleno = 225 (0xe1), region = 24  ;;  %s289_s25 = sshll.u32 (!%p123_p5), %s596_s24, 3 }
  0x32   : > { %s129_s26 = scalar_lea.sflag (!%p123_p5), [#allocation3], %s596_s24  ;;  %s132_s28 = scalar_lea.vmem (!%p123_p5), [#allocation2], %s289_s25 }
  0x38   : > { %442 = dma.done.wait (%p532_p8), %s129_s26, 128  }
  0x39   : > { %444 = vsyncadd (%p532_p8), %s129_s26, 4294967168  ;;  %vm155_vm0 = vcmask 1043456   ;;  %v151_v0 = vld [vmem:[%s132_s28] sm:$0xff]  ;;  %v162_v8 = vlaneseq  ;;  %s290_s27 = sshll.u32 %s596_s24, 1  ;;  %vm169_vm1 = vcmask 24576   ;;  %s292_s18 = sshll.u32 %s463_s9, 5 }
  0x3a   : > { %v153_v1 = vcombine.high %v151_v0, %v151_v0  ;;  %v171_v2 = vsel %vm155_vm0, %v151_v0, 0.0  ;;  %v156_v4 = vsel %vm155_vm0, %v151_v0, -inf  ;;  %s150_s29 = scalar_lea.vmem [#allocation5], %s290_s27  ;;  %s609_s4 = scalar_lea.hbm %s659_s1, %s292_s18 }
  0x3b   : > { %v163_v9 = vand.u32 127, %v162_v8  ;;  %v165_v10 = vshrl.u32 %v162_v8, 7  ;;  %s199_s30 = sshll.u32 %s150_s29, 4  ;;  %s185_s5 = scalar_lea.sflag [#allocation4], %s596_s24  ;;  %s611_s30 = int_to_ptr.vmem [resolvable:$true] %s199_s30 }
  0x3c   : > { %v172_v3 = vsel %vm155_vm0, %v153_v1, 0.0  ;;  %v157_v5 = vsel %vm155_vm0, %v153_v1, -inf  ;;  %s389_s12 = scalar_lea.vmem %s611_s30, 32  ;;  %p668_p9 = scmp.ne.s32.totalorder %s663_s19, 0 }
  0x3d   : > { %v173_v6 = vadd.f32 %v172_v3, %v171_v2  ;;  %v158_v7 = vmax.f32 %v156_v4, %v157_v5  ;;  %v166_v11 = vsub.s32 %v163_v9, %v165_v10  ;;  %p390_p8 = scmp.ne.s32.totalorder %s611_s30, %s389_s12  ;;  %s474_s9 = smov [#allocation5]  }
  0x3e   : > { %s393_s13 = sshll.u32 %s474_s9, 4  ;;  %s394_s13 = int_to_ptr.vmem [resolvable:$false] %s393_s13 }
  0x3f   : > { %174 = vadd.xlane.f32.xlu0 %v173_v6  ;;  %p391_p11 = pnand %p390_p8, %p668_p9  ;;  %s395_s15 = scalar_lea.vmem %s394_s13, 64 }
  0x40   : > { %p396_p7 = scmp.lt.s32.totalorder %s611_s30, %s394_s13  ;;  %p397_p13 = scmp.lt.s32.totalorder %s395_s15, %s389_s12 }
  0x41   : > { %p392_p0 = pneg %p391_p11 }
  0x42   : > { %p398_p3 = por %p397_p13, %p396_p7 }
  0x43   : > { %159 = vmax.xlane.f32.xlu0 %v158_v7 }
  0x44   : > { %p399_p6 = pnand %p398_p3, %p392_p0 }
  0xcc   : > { %v175_v12 = vpop.xlane.xlu0 %174 }
  0xcd   : > { %v176_v13 = vmul.f32 0.00390625, %v175_v12 }
  0xcf   : > { %v181_v14 = vrot.slane %v176_v13, %v166_v11 }
  0xd0   : > { %v160_v15 = vpop.xlane.xlu0 %159 }
  0xd1   : > { %v167_v16 = vrot.slane %v160_v15, %v166_v11  ;;  %183 = vst.msk [vmem:[%s150_s29 + $0x1] sm:$0x1] %vm169_vm1, %v181_v14 }
  0xd3   : > { %170 = vst.msk [vmem:[%s150_s29] sm:$0x1] %vm169_vm1, %v167_v16 }
  0xd4   : > { %402 = shalt.err (!%p399_p6)
}
  0xd5   : > { %s403_s16 = scalar_lea.hbm %s609_s4, 32  ;;  %s407_s23 = scalar_lea.hbm %s659_s1, 64 }
  0xd6   : > { %p404_p4 = scmp.ne.s32.totalorder %s609_s4, %s403_s16  ;;  %p408_p1 = scmp.lt.u32.totalorder %s609_s4, %s659_s1 }
  0xd7   : > { %p409_p2 = scmp.lt.u32.totalorder %s407_s23, %s403_s16  ;;  %p411_p8 = scmp.lt.u32.totalorder %s403_s16, %s609_s4 }
  0xd8   : > { %p405_p10 = pnand %p404_p4, %p668_p9 }
  0xd9   : > { %p410_p5 = por %p409_p2, %p408_p1 }
  0xda   : > { %p406_p12 = pneg %p405_p10 }
  0xdb   : > { %p412_p11 = por %p411_p8, %p410_p5 }
  0xdd   : > { %p413_p0 = pnand %p412_p11, %p406_p12 }
  0xdf   : > { %416 = shalt.err (!%p413_p0)
}
  0xe0   : > { %298 = dma.vmem_to_hbm [thread:$0]  (%p668_p9), %s611_s30, 32, %s609_s4, %s185_s5  }
  0xe1 PF: > { %s211_s26 = sand.u32 1, %s451_s6   ;;  %p669_p7 = scmp.ne.s32.totalorder %s664_s21, 0 }
  0xe2   : > { %p670_p13 = scmp.ge.s32.totalorder %s471_s11, 2  ;;  %s212_s28 = scalar_lea.sflag [#allocation4], %s211_s26 }
  0xe4   : > { %p305_p3 = pnand %p670_p13, %p669_p7 }
  0xe6   : > { %446 = dma.done.wait (!%p305_p3), %s212_s28, 32  }
  0xe7   : > { %448 = vsyncadd (!%p305_p3), %s212_s28, 4294967264  ;;  %s17_s11 = sadd.s32 1, %s471_s11   ;;  %s671_s6 = smov %s455_s7 }
  0xe8   : > { %p14_p6 = scmp.ge.s32.totalorder %s17_s11, 4   ;;  %s672_s7 = smov %s459_s8 }
  0xe9   : > { %s673_s8 = smov %s541_s20  ;;  %s674_s9 = smov %s467_s10 }
  0xea   : > { %s675_s10 = smov %s677_s14  ;;  %16 = sbr.rel (!%p14_p6) target bundleno = 6 (0x6), region = 69 }
  0xf1   :  { %217 = vsyncpa [#allocation3], 1 }
  0xf2   :  { %219 = vsyncpa [#allocation3 + $0x1], 1 }
  0xf3   :  { %220 = vsyncpa [#allocation4], 1 }
  0xf4   :  { %222 = vsyncpa [#allocation4 + $0x1], 1 }

</bundles_post_ra>
